<compile_context>
chip_gen: v5e
topology: v5e:2x2
jax: 0.10.0
libtpu: 0.0.40
codegen_flags: <defaults>
</compile_context>

<pallas_src>
import functools

import jax
import jax.numpy as jnp
from jax import lax
from jax.experimental import pallas as pl
from jax.experimental.pallas import tpu as pltpu


def _round_up(x, m):
    return ((x + m - 1) // m) * m


def _device_params():
    """Generation-aware defaults: MXU-matched column tile + scoped-VMEM budget."""
    kind = ""
    try:
        kind = (jax.devices()[0].device_kind or "").lower()
    except Exception:
        pass
    vmem_cap = None
    try:
        vmem_cap = int(pltpu.get_tpu_info().vmem_capacity_bytes)
    except Exception:
        vmem_cap = None
    is_v7 = "v7" in kind
    if vmem_cap is None:
        if is_v7:
            vmem_cap = 64 << 20            # v7x: 64 MiB physical per TensorCore
        elif ("v5" in kind) or ("v6" in kind):
            vmem_cap = 128 << 20           # v5e / v6e: 128 MiB physical
        else:
            vmem_cap = 86 << 20            # unknown chip: stay conservative
    # 128-wide column tiles for 4x128x128 MXUs (v5e and older), 256 for the
    # 2x256x256 MXUs on v6e / v7x.
    tile_c = 128 if any(v in kind for v in ("v5", "v4", "v3")) else 256
    # ~75% of physical VMEM keeps double-buffering intact while leaving
    # headroom for compiler-internal scratch (v7x ~48 MiB, v5e/v6e ~96 MiB).
    vmem_budget = min((vmem_cap * 3) // 4, 112 << 20)
    return tile_c, vmem_budget, is_v7


def _choose_tiles(b, d, itemsize, tile_c_pref, vmem_budget, prefer_multi_row):
    """Pick (tile_r, tile_c) edges of the score tiles."""
    b8 = _round_up(b, 8)
    if b8 <= max(tile_c_pref, 128):
        # Single tile covers the whole batch; keep it lane-dense once B > 128.
        t = b8 if b8 <= 128 else _round_up(b8, 128)
        return t, t

    tile_c = max(128, _round_up(min(tile_c_pref, 1024), 128))
    budget = (vmem_budget * 3) // 5        # slack for outputs / pipelining

    def footprint(tr, tc):
        return ((2 * tr + 2 * tc) * d * itemsize      # im/s double buffers
                + 3 * tr * tc * 4                     # f32 score/cost temps
                + (tr + tc) * 1024)                   # diag vectors + partials

    if tile_c > 128 and footprint(128, tile_c) > budget:
        tile_c = 128                       # very large D: shrink columns first
    # TODO(synk): for extreme D where even 128x128 tiles exceed the budget,
    # add an inner 'arbitrary' K grid axis with an f32 accumulator scratch.

    bp128 = _round_up(b, 128)
    waste_cap = (bp128 * 5) // 4
    tile_r = tile_c
    for cand in (1024, 512, 256, 128):
        if cand < tile_c or cand > bp128:
            continue
        if _round_up(b, cand) > waste_cap:
            continue                       # don't inflate row padding > ~25%
        if prefer_multi_row and cand > 128 and (b + cand - 1) // cand < 2:
            continue                       # keep >=2 row tiles for v7x's 2 TCs
        if footprint(cand, tile_c) <= budget:
            tile_r = cand
            break
    return tile_r, tile_c


# ---------------------------------------------------------------------------
# Main kernel: tiled hinge costs + partial reductions.
# ---------------------------------------------------------------------------
def _loss_tile_kernel(im_ref, s_ref, dcol_ref, drow_ref,
                      row_out_ref, col_out_ref, *,
                      margin, max_violation, tile_r, tile_c,
                      b_actual, has_pad):
    i = pl.program_id(0)
    j = pl.program_id(1)

    # scores tile = im_i @ s_j.T — transpose folded into the contraction; the
    # MXU consumes the native input dtype and accumulates in f32.
    scores = lax.dot_general(
        im_ref[...], s_ref[...],
        dimension_numbers=(((1,), (1,)), ((), ())),
        preferred_element_type=jnp.float32)            # (tile_r, tile_c) f32

    d_i = dcol_ref[...]        # (tile_r, 1): re-DMA'd only when i changes
    d_j = drow_ref[j]          # (1, tile_c): resident full diag, VMEM indexed

    if max_violation:
        red_rows = lambda c: jnp.max(c, axis=1, keepdims=True)
        red_cols = lambda c: jnp.max(c, axis=0, keepdims=True)
        combine = jnp.maximum
    else:
        red_rows = lambda c: jnp.sum(c, axis=1, keepdims=True)
        red_cols = lambda c: jnp.sum(c, axis=0, keepdims=True)
        combine = lambda a, b: a + b

    # Per-row partials accumulate in the resident (i, 0) output block across
    # the inner 'arbitrary' j axis; costs are >= 0, so a zero init is correct
    # for both the running-sum and the running-max variants.
    @pl.when(j == 0)
    def _init():
        row_out_ref[...] = jnp.zeros_like(row_out_ref)

    def emit(sc):
        # cost_s is fully reduced and stored before cost_im is materialised,
        # so only one (tile_r, tile_c) f32 temp is live at a time next to sc.
        cost_s = jnp.maximum(margin + sc - d_i, 0.0)
        row_out_ref[...] = combine(row_out_ref[...], red_rows(cost_s))
        cost_im = jnp.maximum(margin + sc - d_j, 0.0)
        col_out_ref[...] = red_cols(cost_im).reshape(col_out_ref.shape)

    # Only tiles touching the diagonal (or padded rows/columns) pay for the
    # iota/compare/select masking epilogue; the rest take the unmasked path.
    r_lo = i * tile_r
    c_lo = j * tile_c
    needs_mask = jnp.logical_and(r_lo < c_lo + tile_c, c_lo < r_lo + tile_r)
    if has_pad:                            # static: only emitted when padding exists
        needs_mask = jnp.logical_or(
            needs_mask,
            jnp.logical_or(r_lo + tile_r > b_actual,
                           c_lo + tile_c > b_actual))

    @pl.when(needs_mask)
    def _masked():
        gr = r_lo + lax.broadcasted_iota(jnp.int32, (tile_r, tile_c), 0)
        gc = c_lo + lax.broadcasted_iota(jnp.int32, (tile_r, tile_c), 1)
        keep = gr != gc
        if has_pad:
            keep = jnp.logical_and(
                keep, jnp.logical_and(gr < b_actual, gc < b_actual))
        # One select on scores: masked entries become very negative so both
        # hinges clamp them to exactly 0 (finite fill avoids inf arithmetic).
        emit(jnp.where(keep, scores, jnp.float32(-1e30)))

    @pl.when(jnp.logical_not(needs_mask))
    def _plain():
        emit(scores)


def contrastive_loss(im, s, *, margin=0.0, max_violation=False,
                     block=None, s_buffers=2):
    """Pallas equivalent of ContrastiveLoss(margin, max_violation)(im, s).

    block: optional override of the column (s) tile width; by default it is
           picked from the chip generation (128 on v5e-class, 256 otherwise).
    s_buffers: pipeline depth for the s operand (2 = double buffer; 3 can hide
           exposed DMA on memory-bound v5e/v6e when VMEM headroom allows).
    """
    assert im.ndim == 2 and s.ndim == 2 and im.shape == s.shape
    b, d = im.shape
    itemsize = int(jnp.dtype(im.dtype).itemsize)

    tile_c_pref, vmem_budget, is_v7 = _device_params()
    if block is not None:
        tile_c_pref = int(block)
    tile_r, tile_c = _choose_tiles(b, d, itemsize, tile_c_pref,
                                   vmem_budget, prefer_multi_row=is_v7)

    bp_r = _round_up(b, tile_r)
    bp_c = _round_up(b, tile_c)
    nt_r = bp_r // tile_r
    nt_c = bp_c // tile_c
    has_pad = (bp_r != b) or (bp_c != b)

    # Diagonal diag[k] = <im_k, s_k>: one fused elementwise+reduce pass over
    # the unpadded inputs in the wrapper (cheaper than an extra pallas_call
    # launch + separately padded copies; identical HBM traffic otherwise).
    diag = jnp.sum(im.astype(jnp.float32) * s.astype(jnp.float32), axis=1)
    d_col = jnp.pad(diag, (0, bp_r - b)).reshape(bp_r, 1)
    d_row = jnp.pad(diag, (0, bp_c - b)).reshape(nt_c, 1, tile_c)

    im_p = jnp.pad(im, ((0, bp_r - b), (0, 0))) if bp_r != b else im
    s_p = jnp.pad(s, ((0, bp_c - b), (0, 0))) if bp_c != b else s

    kernel = functools.partial(
        _loss_tile_kernel, margin=float(margin),
        max_violation=bool(max_violation), tile_r=tile_r, tile_c=tile_c,
        b_actual=b, has_pad=has_pad)

    s_spec_kwargs = {}
    if int(s_buffers) > 2:
        # Optional third buffer on the only operand re-DMA'd every inner step.
        s_spec_kwargs["pipeline_mode"] = pl.Buffered(int(s_buffers))

    cost = pl.CostEstimate(
        flops=2 * bp_r * bp_c * d + 8 * bp_r * bp_c,
        transcendentals=0,
        bytes_accessed=(nt_r * bp_c * d + bp_r * d) * itemsize
                       + (2 * bp_r + bp_c + nt_r * bp_c) * 4,
    )

    row_part, col_part = pl.pallas_call(
        kernel,
        out_shape=(
            jax.ShapeDtypeStruct((bp_r, 1), jnp.float32),        # cost_s partials
            jax.ShapeDtypeStruct((nt_r, 1, bp_c), jnp.float32),  # cost_im partials
        ),
        grid_spec=pltpu.PrefetchScalarGridSpec(
            num_scalar_prefetch=0,
            grid=(nt_r, nt_c),
            in_specs=[
                pl.BlockSpec((tile_r, d), lambda i, j: (i, 0)),        # im rows
                pl.BlockSpec((tile_c, d), lambda i, j: (j, 0),         # s columns
                             **s_spec_kwargs),
                pl.BlockSpec((tile_r, 1), lambda i, j: (i, 0)),        # diag (rows)
                pl.BlockSpec((nt_c, 1, tile_c),                        # diag (cols),
                             lambda i, j: (0, 0, 0)),                  # fully resident
            ],
            out_specs=(
                pl.BlockSpec((tile_r, 1), lambda i, j: (i, 0)),
                pl.BlockSpec((1, 1, tile_c), lambda i, j: (i, 0, j)),
            ),
        ),
        compiler_params=pltpu.CompilerParams(
            dimension_semantics=("parallel", "arbitrary"),
            vmem_limit_bytes=int(vmem_budget)),
        cost_estimate=cost,
    )(im_p, s_p, d_col, d_row)

    # Tiny epilogue combine of the per-tile partials (wrapper-side reduce so
    # the row-tile grid axis stays 'parallel' / megacore-shardable).
    loss_s = jnp.sum(row_part)
    if max_violation:
        loss_im = jnp.sum(jnp.max(col_part, axis=0))
    else:
        loss_im = jnp.sum(col_part)
    return loss_s + loss_im


def _reference_loss(im, s, margin=0.0, max_violation=False):
    """Pure-JAX reference mirroring the PyTorch forward, for verification."""
    scores = im.astype(jnp.float32) @ s.astype(jnp.float32).T
    diag = jnp.diag(scores)[:, None]
    cost_s = jnp.maximum(margin + scores - diag, 0.0)
    cost_im = jnp.maximum(margin + scores - diag.T, 0.0)
    eye = jnp.eye(scores.shape[0], dtype=bool)
    cost_s = jnp.where(eye, 0.0, cost_s)
    cost_im = jnp.where(eye, 0.0, cost_im)
    if max_violation:
        cost_s = cost_s.max(axis=1)
        cost_im = cost_im.max(axis=0)
    return cost_s.sum() + cost_im.sum()


if __name__ == "__main__":
    key = jax.random.PRNGKey(0)
    k_im, k_s = jax.random.split(key)

    # Small shapes consistent with the module: batch=8, embedding dim=32.
    B, D = 8, 32
    im = jax.random.normal(k_im, (B, D), dtype=jnp.float32)
    s = jax.random.normal(k_s, (B, D), dtype=jnp.float32)

    loss = jax.block_until_ready(contrastive_loss(im, s, margin=0.0))
    ref = _reference_loss(im, s, margin=0.0)
    assert jnp.allclose(loss, ref, rtol=1e-5, atol=1e-4), (loss, ref)

    loss_mv = jax.block_until_ready(
        contrastive_loss(im, s, margin=0.2, max_violation=True))
    ref_mv = _reference_loss(im, s, margin=0.2, max_violation=True)
    assert jnp.allclose(loss_mv, ref_mv, rtol=1e-5, atol=1e-4), (loss_mv, ref_mv)

    # Tiled + padded path: block=128 forces multi-tile (possibly rectangular)
    # grids with both masked (diag / padded-edge) and fast-path tiles.
    B2, D2 = 200, 64
    im2 = jax.random.normal(k_im, (B2, D2), dtype=jnp.float32)
    s2 = jax.random.normal(k_s, (B2, D2), dtype=jnp.float32)
    for m, mv in ((0.0, False), (0.2, True)):
        got = jax.block_until_ready(
            contrastive_loss(im2, s2, margin=m, max_violation=mv, block=128))
        want = _reference_loss(im2, s2, margin=m, max_violation=mv)
        assert jnp.allclose(got, want, rtol=1e-3, atol=1e-2), (m, mv, got, want)

    # Auto tile selection + genuinely unmasked fast-path tiles (B > 2 tiles).
    B3, D3 = 600, 96
    im3 = jax.random.normal(k_im, (B3, D3), dtype=jnp.float32)
    s3 = jax.random.normal(k_s, (B3, D3), dtype=jnp.float32)
    for m, mv in ((0.0, False), (0.2, True)):
        got = jax.block_until_ready(
            contrastive_loss(im3, s3, margin=m, max_violation=mv))
        want = _reference_loss(im3, s3, margin=m, max_violation=mv)
        assert jnp.allclose(got, want, rtol=2e-3, atol=1e-1), (m, mv, got, want)

    print("KERNEL_OK")
</pallas_src>

<mosaic_0001>
module attributes {stable_mosaic.version = 11 : i64} {
  func.func @_loss_tile_kernel(%arg0: i32, %arg1: i32, %arg2: memref<8x32xf32, #tpu.memory_space<vmem>>, %arg3: memref<8x32xf32, #tpu.memory_space<vmem>>, %arg4: memref<8x1xf32, #tpu.memory_space<vmem>>, %arg5: memref<1x1x8xf32, #tpu.memory_space<vmem>>, %arg6: memref<8x1xf32, #tpu.memory_space<vmem>>, %arg7: memref<1x1x8xf32, #tpu.memory_space<vmem>>) attributes {dimension_semantics = [#tpu.dimension_semantics<parallel>, #tpu.dimension_semantics<arbitrary>], iteration_bounds = array<i64: 1, 1>, scalar_prefetch = 0 : i64, scratch_operands = 0 : i64, tpu.core_type = #tpu.core_type<tc>, window_params = [{transform_indices = @transform_0, window_bounds = array<i64: 8, 32>}, {transform_indices = @transform_1, window_bounds = array<i64: 8, 32>}, {transform_indices = @transform_2, window_bounds = array<i64: 8, 1>}, {pipeline_mode = #tpu.pipeline_mode<synchronous>, transform_indices = @transform_3, window_bounds = array<i64: 1, 1, 8>}, {transform_indices = @transform_4, window_bounds = array<i64: 8, 1>}, {transform_indices = @transform_5, window_bounds = array<i64: 1, 1, 8>}]} {
    %c0 = arith.constant 0 : index
    %c0_0 = arith.constant 0 : index
    %0 = vector.load %arg2[%c0, %c0_0] : memref<8x32xf32, #tpu.memory_space<vmem>>, vector<8x32xf32>
    %c0_1 = arith.constant 0 : index
    %c0_2 = arith.constant 0 : index
    %1 = vector.load %arg3[%c0_1, %c0_2] : memref<8x32xf32, #tpu.memory_space<vmem>>, vector<8x32xf32>
    %cst = arith.constant dense<0.000000e+00> : vector<8x8xf32>
    %2 = tpu.matmul %0, %1, %cst {dimension_numbers = #tpu.dot_dimension_numbers<[1], [1], [0], [0], [0, 0, 1, 0], [], []>} : vector<8x32xf32>, vector<8x32xf32>, vector<8x8xf32> -> vector<8x8xf32>
    %c0_3 = arith.constant 0 : index
    %c0_4 = arith.constant 0 : index
    %3 = vector.load %arg4[%c0_3, %c0_4] : memref<8x1xf32, #tpu.memory_space<vmem>>, vector<8x1xf32>
    %4 = arith.index_cast %arg1 : i32 to index
    %c0_5 = arith.constant 0 : index
    %c0_6 = arith.constant 0 : index
    %5 = vector.load %arg5[%4, %c0_5, %c0_6] : memref<1x1x8xf32, #tpu.memory_space<vmem>>, vector<1x1x8xf32>
    %6 = vector.shape_cast %5 : vector<1x1x8xf32> to vector<1x8xf32>
    %c0_i32 = arith.constant 0 : i32
    %7 = arith.cmpi eq, %arg1, %c0_i32 : i32
    %8 = arith.extui %7 : i1 to i32
    %c0_i32_7 = arith.constant 0 : i32
    %9 = arith.cmpi ne, %8, %c0_i32_7 : i32
    scf.if %9 {
      %cst_13 = arith.constant 0.000000e+00 : f32
      %22 = vector.broadcast %cst_13 : f32 to vector<8x1xf32>
      %c0_14 = arith.constant 0 : index
      %c0_15 = arith.constant 0 : index
      %23 = vector.load %arg6[%c0_14, %c0_15] : memref<8x1xf32, #tpu.memory_space<vmem>>, vector<8x1xf32>
      tpu.vector_store %arg6[%c0_14, %c0_15], %22 {strides = array<i32>} : memref<8x1xf32, #tpu.memory_space<vmem>>, vector<8x1xf32>,
    } else {
    }
    %c8_i32 = arith.constant 8 : i32
    %10 = arith.muli %arg0, %c8_i32 : i32
    %c8_i32_8 = arith.constant 8 : i32
    %11 = arith.muli %arg1, %c8_i32_8 : i32
    %c8_i32_9 = arith.constant 8 : i32
    %12 = arith.addi %11, %c8_i32_9 : i32
    %13 = arith.cmpi slt, %10, %12 : i32
    %c8_i32_10 = arith.constant 8 : i32
    %14 = arith.addi %10, %c8_i32_10 : i32
    %15 = arith.cmpi slt, %11, %14 : i32
    %16 = arith.andi %13, %15 : i1
    %17 = arith.extui %16 : i1 to i32
    %c0_i32_11 = arith.constant 0 : i32
    %18 = arith.cmpi ne, %17, %c0_i32_11 : i32
    scf.if %18 {
      %22 = tpu.iota {dimensions = array<i32: 0>} : vector<8x8xi32>
      %23 = vector.broadcast %10 : i32 to vector<8x8xi32>
      %24 = arith.addi %23, %22 : vector<8x8xi32>
      %25 = tpu.iota {dimensions = array<i32: 1>} : vector<8x8xi32>
      %26 = vector.broadcast %11 : i32 to vector<8x8xi32>
      %27 = arith.addi %26, %25 : vector<8x8xi32>
      %28 = arith.cmpi ne, %24, %27 : vector<8x8xi32>
      %cst_13 = arith.constant -1.000000e+30 : f32
      %29 = vector.broadcast %cst_13 : f32 to vector<8x8xf32>
      %30 = arith.select %28, %2, %29 : vector<8x8xi1>, vector<8x8xf32>
      %cst_14 = arith.constant 0.000000e+00 : f32
      %31 = vector.broadcast %cst_14 : f32 to vector<8x8xf32>
      %32 = arith.addf %31, %30 : vector<8x8xf32>
      %33 = vector.broadcast %3 : vector<8x1xf32> to vector<8x8xf32>
      %34 = arith.subf %32, %33 : vector<8x8xf32>
      %cst_15 = arith.constant 0.000000e+00 : f32
      %35 = vector.broadcast %cst_15 : f32 to vector<8x8xf32>
      %36 = arith.maximumf %34, %35 : vector<8x8xf32>
      %c0_16 = arith.constant 0 : index
      %c0_17 = arith.constant 0 : index
      %37 = vector.load %arg6[%c0_16, %c0_17] : memref<8x1xf32, #tpu.memory_space<vmem>>, vector<8x1xf32>
      %cst_18 = arith.constant dense<0.000000e+00> : vector<8xf32>
      %38 = vector.multi_reduction <add>, %36, %cst_18 [1] : vector<8x8xf32> to vector<8xf32>
      %39 = vector.shape_cast %38 : vector<8xf32> to vector<8x1xf32>
      %40 = arith.addf %37, %39 : vector<8x1xf32>
      %c0_19 = arith.constant 0 : index
      %c0_20 = arith.constant 0 : index
      %41 = vector.load %arg6[%c0_19, %c0_20] : memref<8x1xf32, #tpu.memory_space<vmem>>, vector<8x1xf32>
      tpu.vector_store %arg6[%c0_19, %c0_20], %40 {strides = array<i32>} : memref<8x1xf32, #tpu.memory_space<vmem>>, vector<8x1xf32>,
      %cst_21 = arith.constant 0.000000e+00 : f32
      %42 = vector.broadcast %cst_21 : f32 to vector<8x8xf32>
      %43 = arith.addf %42, %30 : vector<8x8xf32>
      %44 = vector.broadcast %6 : vector<1x8xf32> to vector<8x8xf32>
      %45 = arith.subf %43, %44 : vector<8x8xf32>
      %cst_22 = arith.constant 0.000000e+00 : f32
      %46 = vector.broadcast %cst_22 : f32 to vector<8x8xf32>
      %47 = arith.maximumf %45, %46 : vector<8x8xf32>
      %cst_23 = arith.constant dense<0.000000e+00> : vector<8xf32>
      %48 = vector.multi_reduction <add>, %47, %cst_23 [0] : vector<8x8xf32> to vector<8xf32>
      %49 = vector.shape_cast %48 : vector<8xf32> to vector<1x8xf32>
      %50 = vector.shape_cast %49 : vector<1x8xf32> to vector<1x1x8xf32>
      %c0_24 = arith.constant 0 : index
      %c0_25 = arith.constant 0 : index
      %c0_26 = arith.constant 0 : index
      %51 = vector.load %arg7[%c0_24, %c0_25, %c0_26] : memref<1x1x8xf32, #tpu.memory_space<vmem>>, vector<1x1x8xf32>
      tpu.vector_store %arg7[%c0_24, %c0_25, %c0_26], %50 {strides = array<i32>} : memref<1x1x8xf32, #tpu.memory_space<vmem>>, vector<1x1x8xf32>,
    } else {
    }
    %true = arith.constant true
    %19 = arith.xori %16, %true : i1
    %20 = arith.extui %19 : i1 to i32
    %c0_i32_12 = arith.constant 0 : i32
    %21 = arith.cmpi ne, %20, %c0_i32_12 : i32
    scf.if %21 {
      %cst_13 = arith.constant 0.000000e+00 : f32
      %22 = vector.broadcast %cst_13 : f32 to vector<8x8xf32>
      %23 = arith.addf %22, %2 : vector<8x8xf32>
      %24 = vector.broadcast %3 : vector<8x1xf32> to vector<8x8xf32>
      %25 = arith.subf %23, %24 : vector<8x8xf32>
      %cst_14 = arith.constant 0.000000e+00 : f32
      %26 = vector.broadcast %cst_14 : f32 to vector<8x8xf32>
      %27 = arith.maximumf %25, %26 : vector<8x8xf32>
      %c0_15 = arith.constant 0 : index
      %c0_16 = arith.constant 0 : index
      %28 = vector.load %arg6[%c0_15, %c0_16] : memref<8x1xf32, #tpu.memory_space<vmem>>, vector<8x1xf32>
      %cst_17 = arith.constant dense<0.000000e+00> : vector<8xf32>
      %29 = vector.multi_reduction <add>, %27, %cst_17 [1] : vector<8x8xf32> to vector<8xf32>
      %30 = vector.shape_cast %29 : vector<8xf32> to vector<8x1xf32>
      %31 = arith.addf %28, %30 : vector<8x1xf32>
      %c0_18 = arith.constant 0 : index
      %c0_19 = arith.constant 0 : index
      %32 = vector.load %arg6[%c0_18, %c0_19] : memref<8x1xf32, #tpu.memory_space<vmem>>, vector<8x1xf32>
      tpu.vector_store %arg6[%c0_18, %c0_19], %31 {strides = array<i32>} : memref<8x1xf32, #tpu.memory_space<vmem>>, vector<8x1xf32>,
      %cst_20 = arith.constant 0.000000e+00 : f32
      %33 = vector.broadcast %cst_20 : f32 to vector<8x8xf32>
      %34 = arith.addf %33, %2 : vector<8x8xf32>
      %35 = vector.broadcast %6 : vector<1x8xf32> to vector<8x8xf32>
      %36 = arith.subf %34, %35 : vector<8x8xf32>
      %cst_21 = arith.constant 0.000000e+00 : f32
      %37 = vector.broadcast %cst_21 : f32 to vector<8x8xf32>
      %38 = arith.maximumf %36, %37 : vector<8x8xf32>
      %cst_22 = arith.constant dense<0.000000e+00> : vector<8xf32>
      %39 = vector.multi_reduction <add>, %38, %cst_22 [0] : vector<8x8xf32> to vector<8xf32>
      %40 = vector.shape_cast %39 : vector<8xf32> to vector<1x8xf32>
      %41 = vector.shape_cast %40 : vector<1x8xf32> to vector<1x1x8xf32>
      %c0_23 = arith.constant 0 : index
      %c0_24 = arith.constant 0 : index
      %c0_25 = arith.constant 0 : index
      %42 = vector.load %arg7[%c0_23, %c0_24, %c0_25] : memref<1x1x8xf32, #tpu.memory_space<vmem>>, vector<1x1x8xf32>
      tpu.vector_store %arg7[%c0_23, %c0_24, %c0_25], %41 {strides = array<i32>} : memref<1x1x8xf32, #tpu.memory_space<vmem>>, vector<1x1x8xf32>,
    } else {
    }
    return
  }
  func.func @transform_0(%arg0: i32, %arg1: i32) -> (i32, i32) {
    %c0_i32 = arith.constant 0 : i32
    %c0_i32_0 = arith.constant 0 : i32
    return %arg0, %c0_i32 : i32, i32
  }
  func.func @transform_1(%arg0: i32, %arg1: i32) -> (i32, i32) {
    %c0_i32 = arith.constant 0 : i32
    %c0_i32_0 = arith.constant 0 : i32
    return %arg1, %c0_i32 : i32, i32
  }
  func.func @transform_2(%arg0: i32, %arg1: i32) -> (i32, i32) {
    %c0_i32 = arith.constant 0 : i32
    %c0_i32_0 = arith.constant 0 : i32
    return %arg0, %c0_i32 : i32, i32
  }
  func.func @transform_3(%arg0: i32, %arg1: i32) -> (i32, i32, i32) {
    %c0_i32 = arith.constant 0 : i32
    %c0_i32_0 = arith.constant 0 : i32
    %c0_i32_1 = arith.constant 0 : i32
    %c0_i32_2 = arith.constant 0 : i32
    return %c0_i32, %c0_i32_0, %c0_i32_1 : i32, i32, i32
  }
  func.func @transform_4(%arg0: i32, %arg1: i32) -> (i32, i32) {
    %c0_i32 = arith.constant 0 : i32
    %c0_i32_0 = arith.constant 0 : i32
    return %arg0, %c0_i32 : i32, i32
  }
  func.func @transform_5(%arg0: i32, %arg1: i32) -> (i32, i32, i32) {
    %c0_i32 = arith.constant 0 : i32
    %c0_i32_0 = arith.constant 0 : i32
    return %arg0, %c0_i32, %arg1 : i32, i32, i32
  }
}

</mosaic_0001>

<bundles_post_ra>
// kernel: tpu_custom_call.1
= control target key start
LH: loop header
LB: loop body
LE: loop exit
PB: predicated region body
PF: predicated region fallthrough
CT: control target
= control target key end

     0   :  { %11 = vsyncpa [#allocation3], 0  ;;  %s295_s0 = inlined_call_operand.vmem [shape: f32[8,32], index: 0, kind: input, shape index: {}]   ;;  %s296_s1 = inlined_call_operand.hbm [shape: f32[8,32], index: 1, kind: input, shape index: {}]   ;;  %s297_s2 = inlined_call_operand.vmem [shape: f32[8,1], index: 2, kind: input, shape index: {}]   ;;  %s298_s3 = inlined_call_operand.vmem [shape: f32[1,1,8], index: 3, kind: input, shape index: {}]   ;;  %s299_s4 = inlined_call_operand.vmem [shape: f32[8,1], index: 4, kind: output, shape index: {0}]   ;;  %s300_s5 = inlined_call_operand.hbm [shape: f32[1,1,8], index: 5, kind: output, shape index: {1}]  }
   0x1   :  { %12 = vsyncpa [#allocation4], 0  ;;  %s20_s20 = sshll.u32 %s296_s1, 4  ;;  %s235_s21 = smov [#allocation2]   ;;  %s21_s20 = int_to_ptr.hbm [resolvable:$true] %s20_s20 }
   0x2   :  { %s22_s22 = sshll.u32 %s235_s21, 4  ;;  %s23_s22 = int_to_ptr.vmem [resolvable:$true] %s22_s22 }
   0x3   :  { %25 = dma.hbm_to_vmem [thread:$0]  %s21_s20, 128, %s23_s22, [#allocation3]  }
   0x4   :  { %231 = dma.done.wait [#allocation3], 128  }
   0x5   :  { %232 = vsyncadd [#allocation3], 4294967168  ;;  %v236_v0 = vmov 0   ;;  %vm36_vm0 = vcmask 261120   ;;  %v35_v1 = vld [vmem:[#allocation2] sm:$0xff]  ;;  %vm69_vm1 = vcmask 7168   ;;  %v81_v5 = vlaneseq }
   0x6   :  { %181 = vset.pattern.permute.xlu0 %v236_v0  ;;  %v63_v2 = vld [vmem:[%s297_s2] sm:$0xff]  ;;  %175 = vmatpush.xpose.msk.msra.mxu0 %vm36_vm0, %v35_v1  ;;  %v237_v4 = vmov 0.0   ;;  %vm100_vm3 = vcmask 64512   ;;  %vm119_vm4 = vcmask 57344  }
   0x7   :  { %v34_v3 = vld [vmem:[%s295_s0] sm:$0xff]  ;;  %94 = vperm.xlu0 %181, %v63_v2   ;;  %70 = vst.msk [vmem:[%s299_s4] sm:$0xff] %vm69_vm1, %v237_v4  ;;  %v82_v6 = vshrl.u32 %v81_v5, 7  ;;  %v86_v7 = vand.u32 127, %v81_v5  ;;  %s238_s0 = smov [#allocation5]  }
   0x8   :  { %v182_v8 = vld [vmem:[%s298_s3] ss:$0 sm:$0xff]  ;;  %s161_s29 = sshll.u32 %s238_s0, 4  ;;  %s163_s3 = sshll.u32 %s300_s5, 4  ;;  %s162_s29 = int_to_ptr.vmem [resolvable:$true] %s161_s29  ;;  %s164_s3 = int_to_ptr.hbm [resolvable:$true] %s163_s3 }
   0x9   :  { %176 = vmatmul.msk.f32.vlgmr.msra.gmra.mxu0 %vm36_vm0, %v34_v3  ;;  %vm89_vm2 = vcmp.ne.s32.totalorder %v82_v6, %v86_v7 }
   0xe   :  { %v99_v24 = vld [vmem:[%s299_s4] sm:$0xff] }
  0x79   :  { %v95_v9 = vpop.permute.xlu0 %94 }
  0x86   :  { %v60_v10 = vpop.f32.mrf.mxu0 }
  0x87   :  { %v90_v11 = vsel %vm89_vm2, %v60_v10, -1e+30 }
  0x88   :  { %v110_v12 = vsub.f32 %v90_v11, %v182_v8  ;;  %v97_v13 = vsub.f32 %v90_v11, %v95_v9 }
  0x8a   :  { %v111_v14 = vmax.f32 %v110_v12, 0.0  ;;  %v98_v15 = vmax.f32 %v97_v13, 0.0 }
  0x8c   :  { %v101_v16 = vsel %vm100_vm3, %v98_v15, 0.0  ;;  %v112_v17 = vsel %vm100_vm3, %v111_v14, 0.0 }
  0x8d   :  { %v113_v18 = vrot.slane %v112_v17, 4  ;;  %102 = vadd.xlane.f32.xlu0 %v101_v16 }
  0x8f   :  { %v114_v19 = vadd.f32 %v113_v18, %v112_v17 }
  0x91   :  { %v115_v20 = vrot.slane %v114_v19, 2 }
  0x93   :  { %v116_v21 = vadd.f32 %v115_v20, %v114_v19 }
  0x95   :  { %v117_v22 = vrot.slane %v116_v21, 1 }
  0x97   :  { %v118_v23 = vadd.f32 %v117_v22, %v116_v21 }
  0x99   :  { %120 = vst.msk [vmem:[#allocation5] sm:$0x1] %vm119_vm4, %v118_v23 }
  0x9a   :  { %166 = dma.vmem_to_hbm [thread:$0]  %s162_s29, 16, %s164_s3, [#allocation4]  }
 0x100   :  { %v103_v25 = vpop.xlane.xlu0 %102 }
 0x101   :  { %v104_v26 = vadd.f32 %v103_v25, %v99_v24 }
 0x103   :  { %106 = vst.msk [vmem:[%s299_s4] sm:$0xff] %vm69_vm1, %v104_v26 }
 0x104   :  { %233 = dma.done.wait [#allocation4], 16  }
 0x105   :  { %234 = vsyncadd [#allocation4], 4294967280 }
 0x106   :  { %173 = vsyncpa [#allocation3], 1 }
 0x107   :  { %174 = vsyncpa [#allocation4], 1 }

</bundles_post_ra>
